<compile_context>
chip_gen: v7x
topology: tpu7x:2x2x1
jax: 0.10.0
libtpu: 0.0.40
codegen_flags: <defaults>
</compile_context>

<pallas_src>
import functools

import jax
import jax.numpy as jnp
from jax.experimental import pallas as pl
from jax.experimental.pallas import tpu as pltpu

LANES = 128
ROW_BLOCK = 8   # images / batch-elements per grid step (multiple of 8); sweep per chip.


def _round_up(x, m):
    return ((x + m - 1) // m) * m


# ----------------------------------------------------------------------------
# Parameter plumbing (runs in the XLA wrapper on tiny tensors, once per call)
# ----------------------------------------------------------------------------
def _banded_conv_weights(conv_w, w):
    """conv_w: (KH, KW, Cin, Cout) -> band: (KH, W*Cin, W*Cout).

    band[dy, xin*Cin + c, xout*Cout + co] = conv_w[dy, xin - xout + KW//2, c, co]
    (zero outside the KW-wide band).  The horizontal SAME-padding halo is implicit
    in the band structure, so the input needs no W padding.
    """
    kh, kw, cin, cout = conv_w.shape
    xin = jnp.arange(w)[:, None]
    xout = jnp.arange(w)[None, :]
    kx = xin - xout + kw // 2
    valid = (kx >= 0) & (kx < kw)
    band = conv_w[:, jnp.clip(kx, 0, kw - 1), :, :]            # (KH, W, W, Cin, Cout)
    band = jnp.where(valid[None, :, :, None, None], band, 0.0)
    band = jnp.transpose(band, (0, 1, 3, 2, 4))                # (KH, W, Cin, W, Cout)
    return band.reshape(kh, w * cin, w * cout)


def _pad_lanes(a, lanes=LANES):
    """Zero-pad the last dim to a multiple of 128 so stores are lane-dense."""
    f = a.shape[-1]
    fpad = pl.cdiv(f, lanes) * lanes
    if fpad == f:
        return a
    return jnp.pad(a, [(0, 0)] * (a.ndim - 1) + [(0, fpad - f)])


# ----------------------------------------------------------------------------
# Fused SVCNN kernel: conv3x3 + bias + ReLU + GAP + FC, one row-block per grid step
# ----------------------------------------------------------------------------
def _svcnn_kernel(x_ref, wband_ref, cbias_ref, fcw_ref, fcb_ref, out_ref):
    # x_ref:     (H+2, TN, W*Cin)   bf16, H-leading, vertically halo-padded
    # wband_ref: (3, W*Cin, W*Cout) bf16 banded conv weights (one slab per dy)
    # cbias_ref: (1, W*Cout)        f32 conv bias tiled over x
    # fcw_ref:   (W*Cout, Fpad)     f32, GAP 1/(H*W) folded into the FC weight
    # fcb_ref:   (1, Fpad)          f32
    # out_ref:   (TN, Fpad)         f32 lane-dense output block
    hp, tn, wc = x_ref.shape
    h = hp - 2
    kh = wband_ref.shape[0]
    wcout = wband_ref.shape[-1]
    m = h * tn

    acc = jnp.dot(x_ref[0:h].reshape(m, wc), wband_ref[0],
                  preferred_element_type=jnp.float32)
    for dy in range(1, kh):                                    # windows read from ref
        acc = acc + jnp.dot(x_ref[dy:dy + h].reshape(m, wc), wband_ref[dy],
                            preferred_element_type=jnp.float32)
    act = jnp.maximum(acc + cbias_ref[...], 0.0)               # bias + ReLU (f32)
    pooled = jnp.sum(act.reshape(h, tn, wcout), axis=0)        # GAP-y (1/H in fcw_ref)
    out_ref[...] = (jnp.dot(pooled, fcw_ref[...],
                            preferred_element_type=jnp.float32) + fcb_ref[...])


# ----------------------------------------------------------------------------
# Fused MVCNN kernel: per-view conv+ReLU+GAP, max over views, FC, per batch block
# ----------------------------------------------------------------------------
def _mvcnn_kernel(x_ref, wband_ref, cbias_ref, pmat_ref, fcw_ref, fcb_ref, out_ref,
                  *, n_views, block_b):
    # x_ref:    (H+2, V*TB, W*Cin) bf16, rows view-major within the batch block
    # pmat_ref: (W*Cout, Cpad)     f32 GAP-x matrix with 1/(H*W), lane-padded
    # fcw_ref:  (Cpad, Fpad)       f32 FC weight (rows >= Cout are zero)
    # out_ref:  (TB, Fpad)         f32
    hp, rows, wc = x_ref.shape
    h = hp - 2
    kh = wband_ref.shape[0]
    wcout = wband_ref.shape[-1]
    m = h * rows

    acc = jnp.dot(x_ref[0:h].reshape(m, wc), wband_ref[0],
                  preferred_element_type=jnp.float32)
    for dy in range(1, kh):
        acc = acc + jnp.dot(x_ref[dy:dy + h].reshape(m, wc), wband_ref[dy],
                            preferred_element_type=jnp.float32)
    act = jnp.maximum(acc + cbias_ref[...], 0.0)
    pooled_y = jnp.sum(act.reshape(h, rows, wcout), axis=0)    # (V*TB, W*Cout)
    pooled = jnp.dot(pooled_y, pmat_ref[...],
                     preferred_element_type=jnp.float32)       # (V*TB, Cpad) GAP feats
    # max over views: static 8-aligned sublane slices (view-major block layout)
    vmax = pooled[0:block_b, :]
    for vi in range(1, n_views):
        vmax = jnp.maximum(vmax, pooled[vi * block_b:(vi + 1) * block_b, :])
    out_ref[...] = (jnp.dot(vmax, fcw_ref[...],
                            preferred_element_type=jnp.float32) + fcb_ref[...])


# ----------------------------------------------------------------------------
# Forward passes (wrapper = layout plumbing + pallas_call)
# ----------------------------------------------------------------------------
@jax.jit
def svcnn_forward(params, x_nchw):
    """SVCNN sketch branch: conv3x3(+ReLU) -> global avg pool -> fc embedding."""
    n, cin, h, w = x_nchw.shape
    cout = params["conv_w"].shape[-1]
    f = params["fc_w"].shape[-1]

    tn = ROW_BLOCK
    n_pad = _round_up(n, tn)

    # NCHW -> (H+2, N_pad, W*Cin) bf16; batch pad + halo pad fuse into this one copy.
    xh = jnp.transpose(x_nchw, (2, 0, 3, 1))                   # (H, N, W, C)
    xh = jnp.pad(xh, ((1, 1), (0, n_pad - n), (0, 0), (0, 0)))
    x3 = xh.reshape(h + 2, n_pad, w * cin).astype(jnp.bfloat16)

    wband = _banded_conv_weights(params["conv_w"], w).astype(jnp.bfloat16)
    cbias = jnp.tile(params["conv_b"], (w,)).reshape(1, w * cout).astype(jnp.float32)
    fcw_pad = _pad_lanes(params["fc_w"])                       # (Cout, Fpad)
    fpad = fcw_pad.shape[-1]
    fcw_eff = jnp.tile(fcw_pad, (w, 1)) / (w * h)              # fold GAP 1/(H*W) into FC
    fcb_pad = _pad_lanes(params["fc_b"].reshape(1, f))

    out = pl.pallas_call(
        _svcnn_kernel,
        out_shape=jax.ShapeDtypeStruct((n_pad, fpad), jnp.float32),
        grid=(n_pad // tn,),
        in_specs=[
            pl.BlockSpec((h + 2, tn, w * cin), lambda i: (0, i, 0)),
            pl.BlockSpec((3, w * cin, w * cout), lambda i: (0, 0, 0)),   # resident
            pl.BlockSpec((1, w * cout), lambda i: (0, 0)),               # resident
            pl.BlockSpec((w * cout, fpad), lambda i: (0, 0)),            # resident
            pl.BlockSpec((1, fpad), lambda i: (0, 0)),                   # resident
        ],
        out_specs=pl.BlockSpec((tn, fpad), lambda i: (i, 0)),
        compiler_params=pltpu.CompilerParams(
            dimension_semantics=("parallel",),            # v7x: shard across both TCs
            vmem_limit_bytes=64 * 1024 * 1024),
    )(x3, wband, cbias, fcw_eff, fcb_pad)
    return out[:n, :f]


@jax.jit
def mvcnn_forward(params, x_bvchw):
    """MVCNN render branch: shared backbone per view -> max over views -> fc."""
    b, v, cin, h, w = x_bvchw.shape
    cout = params["conv_w"].shape[-1]
    f = params["fc_w"].shape[-1]

    tb = ROW_BLOCK
    b_pad = _round_up(b, tb)
    nblk = b_pad // tb

    # (B,V,C,H,W) -> (H+2, nblk * V * TB, W*Cin) bf16, view-major within each batch
    # block so per-view slices and output row blocks are 8-aligned.
    xh = jnp.transpose(x_bvchw, (3, 0, 1, 4, 2))               # (H, B, V, W, C)
    xh = jnp.pad(xh, ((1, 1), (0, b_pad - b), (0, 0), (0, 0), (0, 0)))
    xh = xh.reshape(h + 2, nblk, tb, v, w, cin)
    xh = jnp.transpose(xh, (0, 1, 3, 2, 4, 5))                 # (H+2, nblk, V, TB, W, C)
    x3 = xh.reshape(h + 2, nblk * v * tb, w * cin).astype(jnp.bfloat16)

    wband = _banded_conv_weights(params["conv_w"], w).astype(jnp.bfloat16)
    cbias = jnp.tile(params["conv_b"], (w,)).reshape(1, w * cout).astype(jnp.float32)
    pmat = jnp.tile(jnp.eye(cout, dtype=jnp.float32), (w, 1)) / (w * h)   # GAP 1/(H*W)
    pmat_pad = _pad_lanes(pmat)                                # (W*Cout, Cpad)
    cpad = pmat_pad.shape[-1]
    fcw_pad = _pad_lanes(params["fc_w"])                       # (Cout, Fpad)
    fpad = fcw_pad.shape[-1]
    fcw_full = jnp.zeros((cpad, fpad), jnp.float32).at[:cout, :].set(fcw_pad)
    fcb_pad = _pad_lanes(params["fc_b"].reshape(1, f))

    kernel = functools.partial(_mvcnn_kernel, n_views=v, block_b=tb)
    out = pl.pallas_call(
        kernel,
        out_shape=jax.ShapeDtypeStruct((b_pad, fpad), jnp.float32),
        grid=(nblk,),
        in_specs=[
            pl.BlockSpec((h + 2, v * tb, w * cin), lambda i: (0, i, 0)),
            pl.BlockSpec((3, w * cin, w * cout), lambda i: (0, 0, 0)),   # resident
            pl.BlockSpec((1, w * cout), lambda i: (0, 0)),               # resident
            pl.BlockSpec((w * cout, cpad), lambda i: (0, 0)),            # resident
            pl.BlockSpec((cpad, fpad), lambda i: (0, 0)),                # resident
            pl.BlockSpec((1, fpad), lambda i: (0, 0)),                   # resident
        ],
        out_specs=pl.BlockSpec((tb, fpad), lambda i: (i, 0)),
        compiler_params=pltpu.CompilerParams(
            dimension_semantics=("parallel",),
            vmem_limit_bytes=64 * 1024 * 1024),
    )(x3, wband, cbias, pmat_pad, fcw_full, fcb_pad)
    return out[:b, :f]


def cross_modal_cnn_forward(sketch_params, render_params, sketch_data, render_data):
    sketch_features = (svcnn_forward(sketch_params, sketch_data)
                       if sketch_data is not None else None)
    render_features = (mvcnn_forward(render_params, render_data)
                       if render_data is not None else None)
    return (sketch_features, render_features)


# ----------------------------------------------------------------------------
# Parameter init (deterministic, synthetic — no checkpoint loading)
# ----------------------------------------------------------------------------
def init_backbone_params(key, in_channels, conv_channels, feat_dim):
    k0, k1, k2, k3 = jax.random.split(key, 4)
    return {
        "conv_w": 0.1 * jax.random.normal(k0, (3, 3, in_channels, conv_channels),
                                          jnp.float32),
        "conv_b": 0.1 * jax.random.normal(k1, (conv_channels,), jnp.float32),
        "fc_w": 0.1 * jax.random.normal(k2, (conv_channels, feat_dim), jnp.float32),
        "fc_b": 0.1 * jax.random.normal(k3, (feat_dim,), jnp.float32),
    }


# ----------------------------------------------------------------------------
# Pure-JAX references (correctness check only)
# ----------------------------------------------------------------------------
def _svcnn_reference(params, x_nchw):
    x = jnp.transpose(x_nchw, (0, 2, 3, 1))
    conv = jax.lax.conv_general_dilated(
        x, params["conv_w"], (1, 1), "SAME",
        dimension_numbers=("NHWC", "HWIO", "NHWC"),
        precision=jax.lax.Precision.HIGHEST)
    act = jnp.maximum(conv + params["conv_b"], 0.0)
    pooled = jnp.mean(act, axis=(1, 2))
    return pooled @ params["fc_w"] + params["fc_b"]


def _mvcnn_reference(params, x_bvchw):
    b, v = x_bvchw.shape[:2]
    flat = x_bvchw.reshape((b * v,) + x_bvchw.shape[2:])
    x = jnp.transpose(flat, (0, 2, 3, 1))
    conv = jax.lax.conv_general_dilated(
        x, params["conv_w"], (1, 1), "SAME",
        dimension_numbers=("NHWC", "HWIO", "NHWC"),
        precision=jax.lax.Precision.HIGHEST)
    act = jnp.maximum(conv + params["conv_b"], 0.0)
    pooled = jnp.mean(act, axis=(1, 2)).reshape(b, v, -1)
    vmax = jnp.max(pooled, axis=1)
    return vmax @ params["fc_w"] + params["fc_b"]


if __name__ == "__main__":
    key = jax.random.PRNGKey(0)
    k_sp, k_rp, k_sd, k_rd = jax.random.split(key, 4)

    IN_CH, CONV_CH, FEAT = 3, 8, 32
    B, V, HW = 2, 3, 16

    sketch_params = init_backbone_params(k_sp, IN_CH, CONV_CH, FEAT)
    render_params = init_backbone_params(k_rp, IN_CH, CONV_CH, FEAT)

    sketch_data = jax.random.normal(k_sd, (B, IN_CH, HW, HW), jnp.float32)     # NCHW
    render_data = jax.random.normal(k_rd, (B, V, IN_CH, HW, HW), jnp.float32)  # B,V,C,H,W

    sketch_features, render_features = cross_modal_cnn_forward(
        sketch_params, render_params, sketch_data, render_data)
    jax.block_until_ready(sketch_features)
    jax.block_until_ready(render_features)

    assert sketch_features.shape == (B, FEAT)
    assert render_features.shape == (B, FEAT)

    # Correctness vs pure-JAX/XLA f32 HIGHEST reference.  Tolerance is intentionally
    # 2e-2: the kernel runs the conv matmuls with bf16 operands (f32 accumulation),
    # while the reference is full f32; observed error is ~1e-3 at these shapes.
    ref_s = _svcnn_reference(sketch_params, sketch_data)
    ref_r = _mvcnn_reference(render_params, render_data)
    assert jnp.allclose(sketch_features, ref_s, atol=2e-2, rtol=2e-2), \
        float(jnp.max(jnp.abs(sketch_features - ref_s)))
    assert jnp.allclose(render_features, ref_r, atol=2e-2, rtol=2e-2), \
        float(jnp.max(jnp.abs(render_features - ref_r)))

    print("KERNEL_OK")
</pallas_src>

<mosaic_0001>
module attributes {stable_mosaic.version = 11 : i64} {
  func.func @_svcnn_kernel(%arg0: i32, %arg1: memref<18x8x48xbf16, #tpu.memory_space<vmem>>, %arg2: memref<3x48x128xbf16, #tpu.memory_space<vmem>>, %arg3: memref<1x128xf32, #tpu.memory_space<vmem>>, %arg4: memref<128x128xf32, #tpu.memory_space<vmem>>, %arg5: memref<1x128xf32, #tpu.memory_space<vmem>>, %arg6: memref<8x128xf32, #tpu.memory_space<vmem>>) attributes {dimension_semantics = [#tpu.dimension_semantics<parallel>], iteration_bounds = array<i64: 1>, scalar_prefetch = 0 : i64, scratch_operands = 0 : i64, tpu.core_type = #tpu.core_type<tc>, window_params = [{transform_indices = @transform_0, window_bounds = array<i64: 18, 8, 48>}, {pipeline_mode = #tpu.pipeline_mode<synchronous>, transform_indices = @transform_1, window_bounds = array<i64: 3, 48, 128>}, {pipeline_mode = #tpu.pipeline_mode<synchronous>, transform_indices = @transform_2, window_bounds = array<i64: 1, 128>}, {pipeline_mode = #tpu.pipeline_mode<synchronous>, transform_indices = @transform_3, window_bounds = array<i64: 128, 128>}, {pipeline_mode = #tpu.pipeline_mode<synchronous>, transform_indices = @transform_4, window_bounds = array<i64: 1, 128>}, {transform_indices = @transform_5, window_bounds = array<i64: 8, 128>}]} {
    %c0 = arith.constant 0 : index
    %c0_0 = arith.constant 0 : index
    %c0_1 = arith.constant 0 : index
    %0 = vector.load %arg1[%c0, %c0_0, %c0_1] : memref<18x8x48xbf16, #tpu.memory_space<vmem>>, vector<16x8x48xbf16>
    %1 = vector.shape_cast %0 : vector<16x8x48xbf16> to vector<128x48xbf16>
    %c0_2 = arith.constant 0 : index
    %c0_3 = arith.constant 0 : index
    %c0_4 = arith.constant 0 : index
    %2 = vector.load %arg2[%c0_2, %c0_3, %c0_4] : memref<3x48x128xbf16, #tpu.memory_space<vmem>>, vector<1x48x128xbf16>
    %3 = vector.shape_cast %2 : vector<1x48x128xbf16> to vector<48x128xbf16>
    %cst = arith.constant dense<0.000000e+00> : vector<128x128xf32>
    %4 = tpu.matmul %1, %3, %cst {dimension_numbers = #tpu.dot_dimension_numbers<[1], [0], [0], [1], [0, 0, 1, 1], [], []>} : vector<128x48xbf16>, vector<48x128xbf16>, vector<128x128xf32> -> vector<128x128xf32>
    %c1 = arith.constant 1 : index
    %c0_5 = arith.constant 0 : index
    %c0_6 = arith.constant 0 : index
    %5 = vector.load %arg1[%c1, %c0_5, %c0_6] : memref<18x8x48xbf16, #tpu.memory_space<vmem>>, vector<16x8x48xbf16>
    %6 = vector.shape_cast %5 : vector<16x8x48xbf16> to vector<128x48xbf16>
    %c1_7 = arith.constant 1 : index
    %c0_8 = arith.constant 0 : index
    %c0_9 = arith.constant 0 : index
    %7 = vector.load %arg2[%c1_7, %c0_8, %c0_9] : memref<3x48x128xbf16, #tpu.memory_space<vmem>>, vector<1x48x128xbf16>
    %8 = vector.shape_cast %7 : vector<1x48x128xbf16> to vector<48x128xbf16>
    %cst_10 = arith.constant dense<0.000000e+00> : vector<128x128xf32>
    %9 = tpu.matmul %6, %8, %cst_10 {dimension_numbers = #tpu.dot_dimension_numbers<[1], [0], [0], [1], [0, 0, 1, 1], [], []>} : vector<128x48xbf16>, vector<48x128xbf16>, vector<128x128xf32> -> vector<128x128xf32>
    %10 = arith.addf %4, %9 : vector<128x128xf32>
    %c2 = arith.constant 2 : index
    %c0_11 = arith.constant 0 : index
    %c0_12 = arith.constant 0 : index
    %11 = vector.load %arg1[%c2, %c0_11, %c0_12] : memref<18x8x48xbf16, #tpu.memory_space<vmem>>, vector<16x8x48xbf16>
    %12 = vector.shape_cast %11 : vector<16x8x48xbf16> to vector<128x48xbf16>
    %c2_13 = arith.constant 2 : index
    %c0_14 = arith.constant 0 : index
    %c0_15 = arith.constant 0 : index
    %13 = vector.load %arg2[%c2_13, %c0_14, %c0_15] : memref<3x48x128xbf16, #tpu.memory_space<vmem>>, vector<1x48x128xbf16>
    %14 = vector.shape_cast %13 : vector<1x48x128xbf16> to vector<48x128xbf16>
    %cst_16 = arith.constant dense<0.000000e+00> : vector<128x128xf32>
    %15 = tpu.matmul %12, %14, %cst_16 {dimension_numbers = #tpu.dot_dimension_numbers<[1], [0], [0], [1], [0, 0, 1, 1], [], []>} : vector<128x48xbf16>, vector<48x128xbf16>, vector<128x128xf32> -> vector<128x128xf32>
    %16 = arith.addf %10, %15 : vector<128x128xf32>
    %c0_17 = arith.constant 0 : index
    %c0_18 = arith.constant 0 : index
    %17 = vector.load %arg3[%c0_17, %c0_18] : memref<1x128xf32, #tpu.memory_space<vmem>>, vector<1x128xf32>
    %18 = vector.broadcast %17 : vector<1x128xf32> to vector<128x128xf32>
    %19 = arith.addf %16, %18 : vector<128x128xf32>
    %cst_19 = arith.constant 0.000000e+00 : f32
    %20 = vector.broadcast %cst_19 : f32 to vector<128x128xf32>
    %21 = arith.maximumf %19, %20 : vector<128x128xf32>
    %22 = vector.shape_cast %21 : vector<128x128xf32> to vector<16x8x128xf32>
    %cst_20 = arith.constant dense<0.000000e+00> : vector<8x128xf32>
    %23 = vector.multi_reduction <add>, %22, %cst_20 [0] : vector<16x8x128xf32> to vector<8x128xf32>
    %c0_21 = arith.constant 0 : index
    %c0_22 = arith.constant 0 : index
    %24 = vector.load %arg4[%c0_21, %c0_22] : memref<128x128xf32, #tpu.memory_space<vmem>>, vector<128x128xf32>
    %cst_23 = arith.constant dense<0.000000e+00> : vector<8x128xf32>
    %25 = tpu.matmul %23, %24, %cst_23 {dimension_numbers = #tpu.dot_dimension_numbers<[1], [0], [0], [1], [0, 0, 1, 1], [], []>} : vector<8x128xf32>, vector<128x128xf32>, vector<8x128xf32> -> vector<8x128xf32>
    %c0_24 = arith.constant 0 : index
    %c0_25 = arith.constant 0 : index
    %26 = vector.load %arg5[%c0_24, %c0_25] : memref<1x128xf32, #tpu.memory_space<vmem>>, vector<1x128xf32>
    %27 = vector.broadcast %26 : vector<1x128xf32> to vector<8x128xf32>
    %28 = arith.addf %25, %27 : vector<8x128xf32>
    %c0_26 = arith.constant 0 : index
    %c0_27 = arith.constant 0 : index
    %29 = vector.load %arg6[%c0_26, %c0_27] : memref<8x128xf32, #tpu.memory_space<vmem>>, vector<8x128xf32>
    tpu.vector_store %arg6[%c0_26, %c0_27], %28 {strides = array<i32>} : memref<8x128xf32, #tpu.memory_space<vmem>>, vector<8x128xf32>,
    return
  }
  func.func @transform_0(%arg0: i32) -> (i32, i32, i32) {
    %c0_i32 = arith.constant 0 : i32
    %c0_i32_0 = arith.constant 0 : i32
    %c0_i32_1 = arith.constant 0 : i32
    return %c0_i32, %arg0, %c0_i32_0 : i32, i32, i32
  }
  func.func @transform_1(%arg0: i32) -> (i32, i32, i32) {
    %c0_i32 = arith.constant 0 : i32
    %c0_i32_0 = arith.constant 0 : i32
    %c0_i32_1 = arith.constant 0 : i32
    %c0_i32_2 = arith.constant 0 : i32
    return %c0_i32, %c0_i32_0, %c0_i32_1 : i32, i32, i32
  }
  func.func @transform_2(%arg0: i32) -> (i32, i32) {
    %c0_i32 = arith.constant 0 : i32
    %c0_i32_0 = arith.constant 0 : i32
    %c0_i32_1 = arith.constant 0 : i32
    return %c0_i32, %c0_i32_0 : i32, i32
  }
  func.func @transform_3(%arg0: i32) -> (i32, i32) {
    %c0_i32 = arith.constant 0 : i32
    %c0_i32_0 = arith.constant 0 : i32
    %c0_i32_1 = arith.constant 0 : i32
    return %c0_i32, %c0_i32_0 : i32, i32
  }
  func.func @transform_4(%arg0: i32) -> (i32, i32) {
    %c0_i32 = arith.constant 0 : i32
    %c0_i32_0 = arith.constant 0 : i32
    %c0_i32_1 = arith.constant 0 : i32
    return %c0_i32, %c0_i32_0 : i32, i32
  }
  func.func @transform_5(%arg0: i32) -> (i32, i32) {
    %c0_i32 = arith.constant 0 : i32
    %c0_i32_0 = arith.constant 0 : i32
    return %arg0, %c0_i32 : i32, i32
  }
}

</mosaic_0001>

<bundles_post_ra>
// kernel: tile.13
= control target key start
LH: loop header
LB: loop body
LE: loop exit
PB: predicated region body
PF: predicated region fallthrough
CT: control target
= control target key end

     0   :  { %s28_s0 = inlined_call_operand.vmem [shape: f32[8], index: 0, kind: input, shape index: {}]   ;;  %s29_s1 = inlined_call_operand.vmem [shape: f32[16,8], index: 1, kind: output, shape index: {}]  }
   0x1   :  { %v4_v0 = vld [vmem:[%s28_s0] ss:$0 sm:$0xff] }
   0x2   :  { %5 = vst [vmem:[%s29_s1] sm:$0xff] %v4_v0  ;;  %8 = vst [vmem:[%s29_s1 + $0x8] sm:$0xff] %v4_v0 }

// kernel: tile.14
= control target key start
LH: loop header
LB: loop body
LE: loop exit
PB: predicated region body
PF: predicated region fallthrough
CT: control target
= control target key end

     0   :  { %s167_s10 = smov 120   ;;  %s168_s11 = smov 104   ;;  %vm4_vm0 = vcmask 64512   ;;  %s253_s0 = inlined_call_operand.vmem [shape: f32[16,8], index: 0, kind: input, shape index: {}]   ;;  %s254_s1 = inlined_call_operand.hbm [shape: f32[1,128], index: 1, kind: output, shape index: {}]  }
   0x1   :  { %v112_v0 = vld [vmem:[%s253_s0 + $0xf] sm:$0x1]   ;;  %v114_v1 = vld [vmem:[%s253_s0 + $0xd] sm:$0x1]   ;;  %v113_v2 = vld [vmem:[%s253_s0 + $0xe] sm:$0x1]  }
   0x2   :  { %8 = vrot.lane.b32.xlu0 %v112_v0, %s167_s10  ;;  %20 = vrot.lane.b32.xlu1 %v114_v1, %s168_s11  ;;  %v115_v3 = vld [vmem:[%s253_s0 + $0xc] sm:$0x1]   ;;  %s169_s16 = smov 112   ;;  %s170_s17 = smov 96   ;;  %v116_v4 = vld [vmem:[%s253_s0 + $0xb] sm:$0x1]  }
   0x3   :  { %v117_v5 = vld [vmem:[%s253_s0 + $0xa] sm:$0x1]   ;;  %v3_v6 = vld [vmem:[%s253_s0] sm:$0x1]  }
   0x6   :  { %14 = vrot.lane.b32.xlu0 %v113_v2, %s169_s16  ;;  %26 = vrot.lane.b32.xlu1 %v115_v3, %s170_s17 }
   0x7   :  { %2 = vsyncpa [#allocation1], 0  ;;  %s171_s24 = smov 88   ;;  %s172_s25 = smov 80   ;;  %5 = vst.msk [vmem:[#allocation2] sm:$0x1] %vm4_vm0, %v3_v6  }
   0x8   :  { %v118_v7 = vld [vmem:[%s253_s0 + $0x9] sm:$0x1]   ;;  %v119_v8 = vld [vmem:[%s253_s0 + $0x8] sm:$0x1]   ;;  %s173_s30 = smov 72   ;;  %s174_s2 = smov 64  }
   0x9   :  { %v120_v9 = vld [vmem:[%s253_s0 + $0x7] sm:$0x1]   ;;  %v121_v10 = vld [vmem:[%s253_s0 + $0x6] sm:$0x1]   ;;  %s175_s7 = smov 56   ;;  %s176_s8 = smov 48  }
   0xa   :  { %32 = vrot.lane.b32.xlu0 %v116_v4, %s171_s24  ;;  %38 = vrot.lane.b32.xlu1 %v117_v5, %s172_s25  ;;  %v122_v11 = vld [vmem:[%s253_s0 + $0x5] sm:$0x1]   ;;  %v123_v12 = vld [vmem:[%s253_s0 + $0x4] sm:$0x1]   ;;  %s177_s13 = smov 40   ;;  %s178_s14 = smov 32  }
   0xb   :  { %v124_v13 = vld [vmem:[%s253_s0 + $0x3] sm:$0x1]   ;;  %v125_v14 = vld [vmem:[%s253_s0 + $0x2] sm:$0x1]   ;;  %s179_s19 = smov 24   ;;  %s180_s20 = smov 16  }
   0xc   :  { %v126_v15 = vld [vmem:[%s253_s0 + $0x1] sm:$0x1]   ;;  %s181_s0 = smov 8   ;;  %vm10_vm1 = vcmask 1048512   ;;  %vm16_vm2 = vcmask 982912   ;;  %vm22_vm3 = vcmask 917312  }
   0xd   :  { %vm28_vm4 = vcmask 851712   ;;  %vm34_vm5 = vcmask 786112   ;;  %vm40_vm6 = vcmask 720512   ;;  %vm46_vm7 = vcmask 654912   ;;  %s182_s23 = smov [#allocation0]  }
   0xe   :  { %44 = vrot.lane.b32.xlu0 %v118_v7, %s173_s30  ;;  %50 = vrot.lane.b32.xlu1 %v119_v8, %s174_s2  ;;  %vm52_vm8 = vcmask 589312   ;;  %vm58_vm9 = vcmask 523712   ;;  %vm64_vm10 = vcmask 458112   ;;  %vm70_vm11 = vcmask 392512   ;;  %s106_s24 = sshll.u32 %s182_s23, 4  ;;  %s107_s24 = int_to_ptr.vmem [resolvable:$true] %s106_s24 }
   0xf   :  { %vm76_vm12 = vcmask 326912   ;;  %vm82_vm13 = vcmask 261312   ;;  %vm88_vm14 = vcmask 195712   ;;  %vm94_vm15 = vcmask 130112   ;;  %s143_s25 = scalar_lea.vmem %s107_s24, 16  ;;  %s147_s26 = scalar_lea.vmem %s107_s24, 32 }
  0x10   :  { %p144_p0 = scmp.ne.s32.totalorder %s107_s24, %s143_s25  ;;  %p148_p1 = scmp.lt.s32.totalorder %s107_s24, %s107_s24 }
  0x11   :  { %p149_p2 = scmp.lt.s32.totalorder %s147_s26, %s143_s25 }
  0x12   :  { %56 = vrot.lane.b32.xlu0 %v120_v9, %s175_s7  ;;  %62 = vrot.lane.b32.xlu1 %v121_v10, %s176_s8 }
  0x13   :  { %p150_p3 = por %p149_p2, %p148_p1 }
  0x15   :  { %p151_p4 = pnand %p150_p3, %p144_p0 }
  0x16   :  { %68 = vrot.lane.b32.xlu0 %v122_v11, %s177_s13  ;;  %74 = vrot.lane.b32.xlu1 %v123_v12, %s178_s14 }
  0x1a   :  { %80 = vrot.lane.b32.xlu0 %v124_v13, %s179_s19  ;;  %86 = vrot.lane.b32.xlu1 %v125_v14, %s180_s20 }
  0x1e   :  { %92 = vrot.lane.b32.xlu0 %v126_v15, %s181_s0 }
  0x74   :  { %v9_v16 = vpop.permute.xlu0 %8   ;;  %v21_v17 = vpop.permute.xlu1 %20  }
  0x75   :  { %11 = vst.msk [vmem:[#allocation2] sm:$0x1] %vm10_vm1, %v9_v16  }
  0x78   :  { %v15_v18 = vpop.permute.xlu0 %14   ;;  %v27_v19 = vpop.permute.xlu1 %26  }
  0x79   :  { %17 = vst.msk [vmem:[#allocation2] sm:$0x1] %vm16_vm2, %v15_v18  }
  0x7a   :  { %23 = vst.msk [vmem:[#allocation2] sm:$0x1] %vm22_vm3, %v21_v17  }
  0x7b   :  { %29 = vst.msk [vmem:[#allocation2] sm:$0x1] %vm28_vm4, %v27_v19  }
  0x7c   :  { %v33_v20 = vpop.permute.xlu0 %32   ;;  %v39_v21 = vpop.permute.xlu1 %38  }
  0x7d   :  { %35 = vst.msk [vmem:[#allocation2] sm:$0x1] %vm34_vm5, %v33_v20  }
  0x7e   :  { %41 = vst.msk [vmem:[#allocation2] sm:$0x1] %vm40_vm6, %v39_v21  }
  0x80   :  { %v45_v22 = vpop.permute.xlu0 %44   ;;  %v51_v23 = vpop.permute.xlu1 %50  }
  0x81   :  { %47 = vst.msk [vmem:[#allocation2] sm:$0x1] %vm46_vm7, %v45_v22  }
  0x82   :  { %53 = vst.msk [vmem:[#allocation2] sm:$0x1] %vm52_vm8, %v51_v23  }
  0x84   :  { %v57_v24 = vpop.permute.xlu0 %56   ;;  %v63_v25 = vpop.permute.xlu1 %62  }
  0x85   :  { %59 = vst.msk [vmem:[#allocation2] sm:$0x1] %vm58_vm9, %v57_v24  }
  0x86   :  { %65 = vst.msk [vmem:[#allocation2] sm:$0x1] %vm64_vm10, %v63_v25  }
  0x88   :  { %v69_v26 = vpop.permute.xlu0 %68   ;;  %v75_v27 = vpop.permute.xlu1 %74  }
  0x89   :  { %71 = vst.msk [vmem:[#allocation2] sm:$0x1] %vm70_vm11, %v69_v26  }
  0x8a   :  { %77 = vst.msk [vmem:[#allocation2] sm:$0x1] %vm76_vm12, %v75_v27  }
  0x8c   :  { %v81_v28 = vpop.permute.xlu0 %80   ;;  %v87_v29 = vpop.permute.xlu1 %86  }
  0x8d   :  { %83 = vst.msk [vmem:[#allocation2] sm:$0x1] %vm82_vm13, %v81_v28  }
  0x8e   :  { %89 = vst.msk [vmem:[#allocation2] sm:$0x1] %vm88_vm14, %v87_v29  }
  0x90   :  { %v93_v30 = vpop.permute.xlu0 %92  }
  0x91   :  { %95 = vst.msk [vmem:[#allocation2] sm:$0x1] %vm94_vm15, %v93_v30  }
  0x98   :  { %v99_v31 = vld [vmem:[#allocation2] sm:$0x1] }
  0x99   :  { %101 = vst [vmem:[#allocation0] sm:$0x1] %v99_v31 }
  0x9a   :  { %154 = shalt.err (!%p151_p4)
}
  0x9b   :  { %s155_s29 = scalar_lea.hbm %s254_s1, 16 }
  0x9c   :  { %p156_p5 = scmp.ne.s32.totalorder %s254_s1, %s155_s29  ;;  %p159_p6 = scmp.lt.u32.totalorder %s155_s29, %s254_s1 }
  0x9e   :  { %p161_p7 = pnand %p159_p6, %p156_p5 }
  0xa0   :  { %164 = shalt.err (!%p161_p7)
}
  0xa1   :  { %109 = dma.vmem_to_hbm [thread:$0]  %s107_s24, 16, %s254_s1, [#allocation1]  }
  0xa2   :  { %165 = dma.done.wait [#allocation1], 16  }
  0xa3   :  { %166 = vsyncadd [#allocation1], 4294967280 }
  0xa4   :  { %111 = vsyncpa [#allocation1], 1 }

// kernel: svcnn_forward.1
= control target key start
LH: loop header
LB: loop body
LE: loop exit
PB: predicated region body
PF: predicated region fallthrough
CT: control target
= control target key end

     0   :  { %10 = vsyncpa [#allocation3], 0  ;;  %s1497_s0 = inlined_call_operand.hbm [shape: bf16[18,8,48], index: 0, kind: input, shape index: {}]   ;;  %s1498_s1 = inlined_call_operand.hbm [shape: bf16[3,48,128], index: 1, kind: input, shape index: {}]   ;;  %s1499_s2 = inlined_call_operand.hbm [shape: f32[1,128], index: 2, kind: input, shape index: {}]   ;;  %s1500_s3 = inlined_call_operand.hbm [shape: f32[128,128], index: 3, kind: input, shape index: {}]   ;;  %s1501_s4 = inlined_call_operand.hbm [shape: f32[1,128], index: 4, kind: input, shape index: {}]   ;;  %s1502_s5 = inlined_call_operand.hbm [shape: f32[8,128], index: 5, kind: output, shape index: {}]  }
   0x1   :  { %11 = vsyncpa [#allocation6], 0 }
   0x2   :  { %12 = vsyncpa [#allocation9], 0 }
   0x3   :  { %13 = vsyncpa [#allocation4], 0  ;;  %s1327_s18 = smov [#allocation5]   ;;  %s1328_s20 = smov [#allocation8]  }
   0x4   :  { %s31_s19 = sshll.u32 %s1327_s18, 4  ;;  %s53_s21 = sshll.u32 %s1328_s20, 4  ;;  %s32_s19 = int_to_ptr.vmem [resolvable:$true] %s31_s19  ;;  %s1370_s21 = int_to_ptr.vmem [resolvable:$true] %s53_s21 }
   0x5   :  { %s1187_s24 = scalar_lea.hbm %s1498_s1, 1152 }
   0x6   :  { %p1188_p0 = scmp.ne.s32.totalorder %s1498_s1, %s1187_s24  ;;  %p1191_p1 = scmp.lt.u32.totalorder %s1187_s24, %s1498_s1 }
   0x8   :  { %p1193_p2 = pnand %p1191_p1, %p1188_p0 }
   0xa   :  { %1196 = shalt.err (!%p1193_p2)
}
   0xb   :  { %s1197_s29 = scalar_lea.vmem %s32_s19, 1152  ;;  %p1202_p4 = scmp.lt.s32.totalorder %s32_s19, %s32_s19 }
   0xc   :  { %p1198_p3 = scmp.ne.s32.totalorder %s32_s19, %s1197_s29  ;;  %p1203_p5 = scmp.lt.s32.totalorder %s1197_s29, %s1197_s29 }
   0xe   :  { %p1204_p6 = por %p1203_p5, %p1202_p4 }
  0x10   :  { %p1205_p7 = pnand %p1204_p6, %p1198_p3 }
  0x12   :  { %1208 = shalt.err (!%p1205_p7)
}
  0x13   :  { %s1329_s30 = smov 64   ;;  %s1330_s6 = smov 4  }
  0x14   :  { %37 = dma.hbm_to_vmem [thread:$0]  %s1498_s1, 1152, %s32_s19, [#allocation6], %s1329_s30, %s1329_s30, %s1330_s6  }
  0x15   :  { %s1209_s11 = scalar_lea.hbm %s1500_s3, 2048 }
  0x16   :  { %p1210_p8 = scmp.ne.s32.totalorder %s1500_s3, %s1209_s11  ;;  %p1213_p9 = scmp.lt.u32.totalorder %s1209_s11, %s1500_s3 }
  0x18   :  { %p1215_p10 = pnand %p1213_p9, %p1210_p8 }
  0x1a   :  { %1218 = shalt.err (!%p1215_p10)
}
  0x1b   :  { %s1219_s16 = scalar_lea.vmem %s1370_s21, 2048  ;;  %p1224_p12 = scmp.lt.s32.totalorder %s1370_s21, %s1370_s21 }
  0x1c   :  { %p1220_p11 = scmp.ne.s32.totalorder %s1370_s21, %s1219_s16  ;;  %p1225_p13 = scmp.lt.s32.totalorder %s1219_s16, %s1219_s16 }
  0x1e   :  { %p1226_p0 = por %p1225_p13, %p1224_p12 }
  0x20   :  { %p1227_p1 = pnand %p1226_p0, %p1220_p11 }
  0x22   :  { %1230 = shalt.err (!%p1227_p1)
}
  0x23   :  { %s1331_s1 = smov 128   ;;  %s1332_s17 = smov 8  }
  0x24   :  { %59 = dma.hbm_to_vmem [thread:$0]  %s1500_s3, 2048, %s1370_s21, [#allocation9], %s1331_s1, %s1331_s1, %s1332_s17  }
  0x25   :  { %s1333_s20 = smov [#allocation2]   ;;  %s1334_s23 = smov [#allocation7]  }
  0x26   :  { %s19_s22 = sshll.u32 %s1333_s20, 4  ;;  %s44_s24 = sshll.u32 %s1334_s23, 4  ;;  %s20_s22 = int_to_ptr.vmem [resolvable:$true] %s19_s22  ;;  %s45_s24 = int_to_ptr.vmem [resolvable:$true] %s44_s24 }
  0x27   :  { %s1231_s27 = scalar_lea.hbm %s1497_s0, 1152 }
  0x28   :  { %p1232_p2 = scmp.ne.s32.totalorder %s1497_s0, %s1231_s27  ;;  %p1235_p3 = scmp.lt.u32.totalorder %s1231_s27, %s1497_s0 }
  0x2a   :  { %p1237_p4 = pnand %p1235_p3, %p1232_p2 }
  0x2c   :  { %1240 = shalt.err (!%p1237_p4)
}
  0x2d   :  { %s1241_s3 = scalar_lea.vmem %s20_s22, 1152  ;;  %p1246_p6 = scmp.lt.s32.totalorder %s20_s22, %s20_s22 }
  0x2e   :  { %p1242_p5 = scmp.ne.s32.totalorder %s20_s22, %s1241_s3  ;;  %p1247_p7 = scmp.lt.s32.totalorder %s1241_s3, %s1241_s3 }
  0x30   :  { %p1248_p8 = por %p1247_p7, %p1246_p6 }
  0x32   :  { %p1249_p9 = pnand %p1248_p8, %p1242_p5 }
  0x34   :  { %1252 = shalt.err (!%p1249_p9)
}
  0x35   :  { %25 = dma.hbm_to_vmem [thread:$0]  %s1497_s0, 1152, %s20_s22, [#allocation3], %s1329_s30, %s1329_s30, %s1330_s6  }
  0x36   :  { %s1253_s12 = scalar_lea.hbm %s1499_s2, 16 }
  0x37   :  { %p1254_p10 = scmp.ne.s32.totalorder %s1499_s2, %s1253_s12  ;;  %p1257_p11 = scmp.lt.u32.totalorder %s1253_s12, %s1499_s2 }
  0x39   :  { %p1259_p12 = pnand %p1257_p11, %p1254_p10 }
  0x3b   :  { %1262 = shalt.err (!%p1259_p12)
}
  0x3c   :  { %s1263_s1 = scalar_lea.vmem %s45_s24, 16  ;;  %s1267_s17 = scalar_lea.vmem %s45_s24, 32 }
  0x3d   :  { %p1264_p13 = scmp.ne.s32.totalorder %s45_s24, %s1263_s1  ;;  %p1268_p0 = scmp.lt.s32.totalorder %s45_s24, %s45_s24 }
  0x3e   :  { %p1269_p1 = scmp.lt.s32.totalorder %s1267_s17, %s1263_s1 }
  0x40   :  { %p1270_p2 = por %p1269_p1, %p1268_p0 }
  0x42   :  { %p1271_p3 = pnand %p1270_p2, %p1264_p13 }
  0x44   :  { %1274 = shalt.err (!%p1271_p3)
}
  0x45   :  { %47 = dma.hbm_to_vmem [thread:$0]  %s1499_s2, 16, %s45_s24, [#allocation6]  }
  0x46   :  { %s1335_s6 = smov [#allocation10]   ;;  %s1275_s22 = scalar_lea.hbm %s1501_s4, 16 }
  0x47   :  { %s66_s18 = sshll.u32 %s1335_s6, 4  ;;  %p1276_p4 = scmp.ne.s32.totalorder %s1501_s4, %s1275_s22  ;;  %s67_s18 = int_to_ptr.vmem [resolvable:$true] %s66_s18 }
  0x48   :  { %p1279_p5 = scmp.lt.u32.totalorder %s1275_s22, %s1501_s4 }
  0x4a   :  { %p1281_p6 = pnand %p1279_p5, %p1276_p4 }
  0x4c   :  { %1284 = shalt.err (!%p1281_p6)
}
  0x4d   :  { %s1285_s28 = scalar_lea.vmem %s67_s18, 16  ;;  %s1289_s2 = scalar_lea.vmem %s67_s18, 32 }
  0x4e   :  { %p1286_p7 = scmp.ne.s32.totalorder %s67_s18, %s1285_s28  ;;  %p1290_p8 = scmp.lt.s32.totalorder %s67_s18, %s67_s18 }
  0x4f   :  { %p1291_p9 = scmp.lt.s32.totalorder %s1289_s2, %s1285_s28 }
  0x51   :  { %p1292_p10 = por %p1291_p9, %p1290_p8 }
  0x53   :  { %p1293_p11 = pnand %p1292_p10, %p1286_p7 }
  0x55   :  { %1296 = shalt.err (!%p1293_p11)
}
  0x56   :  { %69 = dma.hbm_to_vmem [thread:$0]  %s1501_s4, 16, %s67_s18, [#allocation9]  }
  0x57   :  { %1319 = dma.done.wait [#allocation3], 1152  }
  0x58   :  { %1320 = vsyncadd [#allocation3], 4294966144 }
  0x59   :  { %1321 = dma.done.wait [#allocation6], 1168  }
  0x5a   :  { %1322 = vsyncadd [#allocation6], 4294966128 }
  0x5b   :  { %1323 = dma.done.wait [#allocation9], 2064  }
  0x5c   :  { %1324 = vsyncadd [#allocation9], 4294965232  ;;  %v1154_v0 = vld [vmem:[#allocation5] sm:$0xff]   ;;  %v1155_v1 = vld [vmem:[#allocation5 + $0x8] sm:$0xff]   ;;  %vm190_vm0 = vcmask 392192   ;;  %v1336_v36 = vmov 0.0|0.0  }
  0x5d   :  { %1006 = vmatprep.subr.bf16.mxu0 %v1154_v0  ;;  %v1157_v2 = vld [vmem:[#allocation2] sm:$0xff]   ;;  %v1156_v3 = vld [vmem:[#allocation5 + $0x10] sm:$0xff]   ;;  %v1158_v4 = vld [vmem:[#allocation2 + $0x8] sm:$0xff]   ;;  %vm1337_vm1 = vmmov 0   ;;  %v1338_v58 = vmov 0.0   ;;  %s1339_s4 = smov [#allocation11]  }
  0x5e   :  { %1007 = vmatpush3.bf16.msra.mxu0 %v1154_v0  ;;  %1012 = vmatprep.mubr.msk.bf16.mxu0 %vm190_vm0, %v1157_v2  ;;  %v1159_v5 = vld [vmem:[#allocation5 + $0x30] sm:$0xff]   ;;  %v1160_v6 = vld [vmem:[#allocation2 + $0x10] sm:$0xff]   ;;  %v1162_v7 = vld [vmem:[#allocation5 + $0x38] sm:$0xff]   ;;  %s864_s7 = sshll.u32 %s1339_s4, 4  ;;  %s865_s7 = int_to_ptr.vmem [resolvable:$true] %s864_s7 }
  0x5f   :  { %1008 = vmatprep.subr.bf16.mxu0 %v1155_v1  ;;  %v1165_v8 = vld [vmem:[#allocation5 + $0x18] sm:$0xff]   ;;  %v1166_v9 = vld [vmem:[#allocation5 + $0x20] sm:$0xff]   ;;  %v1170_v11 = vld [vmem:[#allocation5 + $0x28] sm:$0xff]   ;;  %s1297_s8 = scalar_lea.vmem %s865_s7, 128  ;;  %p1302_p13 = scmp.lt.s32.totalorder %s865_s7, %s865_s7 }
  0x60   :  { %984 = vmatprep.subr.bf16.mxu1 %v1165_v8  ;;  %v1167_v10 = vld [vmem:[#allocation5 + $0x40] sm:$0xff]   ;;  %v1161_v13 = vld [vmem:[#allocation2 + $0x18] sm:$0xff]   ;;  %v1163_v14 = vld [vmem:[#allocation2 + $0x20] sm:$0xff]   ;;  %p1298_p12 = scmp.ne.s32.totalorder %s865_s7, %s1297_s8  ;;  %p1303_p0 = scmp.lt.s32.totalorder %s1297_s8, %s1297_s8 }
  0x61   :  { %985 = vmatpush3.bf16.msra.mxu1 %v1165_v8  ;;  %v1171_v12 = vld [vmem:[#allocation2 + $0x4] sm:$0xff]   ;;  %v1172_v15 = vld [vmem:[#allocation2 + $0xc] sm:$0xff]   ;;  %v1175_v16 = vld [vmem:[#allocation2 + $0x14] sm:$0xff]  }
  0x62   :  { %1009 = vmatpush3.bf16.msra.mxu0 %v1155_v1  ;;  %986 = vmatprep.subr.bf16.mxu1 %v1166_v9  ;;  %v1164_v17 = vld [vmem:[#allocation2 + $0x28] sm:$0xff]   ;;  %v1168_v18 = vld [vmem:[#allocation2 + $0x30] sm:$0xff]   ;;  %v1176_v19 = vld [vmem:[#allocation2 + $0x1c] sm:$0xff]   ;;  %p1304_p1 = por %p1303_p0, %p1302_p13 }
  0x63   :  { %1010 = vmatprep.subr.bf16.mxu0 %v1156_v3  ;;  %990 = vmatprep.mubr.msk.bf16.mxu1 %vm190_vm0, %v1171_v12  ;;  %v1179_v20 = vld [vmem:[#allocation2 + $0x24] sm:$0xff]   ;;  %v1169_v21 = vld [vmem:[#allocation2 + $0x38] sm:$0xff]   ;;  %v1180_v23 = vld [vmem:[#allocation2 + $0x2c] sm:$0xff]  }
  0x64   :  { %v1173_v22 = vld [vmem:[#allocation2 + $0x8] sm:$0xff]   ;;  %v1183_v24 = vld [vmem:[#allocation2 + $0x34] sm:$0xff]   ;;  %v1184_v27 = vld [vmem:[#allocation2 + $0x3c] sm:$0xff]   ;;  %p1305_p2 = pnand %p1304_p1, %p1298_p12 }
  0x65   :  { %987 = vmatpush3.bf16.msra.mxu1 %v1166_v9  ;;  %v1174_v25 = vld [vmem:[#allocation2 + $0x10] sm:$0xff]   ;;  %v1177_v26 = vld [vmem:[#allocation2 + $0x18] sm:$0xff]   ;;  %v1178_v28 = vld [vmem:[#allocation2 + $0x20] sm:$0xff]  }
  0x66   :  { %1011 = vmatpush3.bf16.msra.mxu0 %v1156_v3  ;;  %988 = vmatprep.subr.bf16.mxu1 %v1170_v11  ;;  %v1181_v29 = vld [vmem:[#allocation2 + $0x28] sm:$0xff]   ;;  %v1182_v30 = vld [vmem:[#allocation2 + $0x30] sm:$0xff]   ;;  %v1185_v31 = vld [vmem:[#allocation2 + $0x38] sm:$0xff]  }
  0x67   :  { %1028 = vmatprep.subr.bf16.mxu0 %v1159_v5  ;;  %v1186_v32 = vld [vmem:[#allocation2 + $0x40] sm:$0xff]   ;;  %v764_v33 = vld [vmem:[#allocation8] sm:$0xff]  ;;  %v767_v38 = vld [vmem:[#allocation8 + $0x18] sm:$0xff] }
  0x68   :  { %v765_v34 = vld [vmem:[#allocation8 + $0x8] sm:$0xff]  ;;  %v766_v37 = vld [vmem:[#allocation8 + $0x10] sm:$0xff]  ;;  %v768_v40 = vld [vmem:[#allocation8 + $0x20] sm:$0xff] }
  0x69   :  { %1013 = vmatmul.mubr.msk.bf16.vlgmr.msra.gmra.mrb[0].mxu0 %vm190_vm0, %v1158_v4  ;;  %989 = vmatpush3.bf16.msra.mxu1 %v1170_v11  ;;  %v1086_v35 = vpack.c.bf16 %v765_v34, %v764_v33  ;;  %v1089_v39 = vpack.c.bf16 %v767_v38, %v766_v37  ;;  %v769_v41 = vld [vmem:[#allocation8 + $0x28] sm:$0xff]  ;;  %v770_v43 = vld [vmem:[#allocation8 + $0x30] sm:$0xff]  ;;  %v771_v44 = vld [vmem:[#allocation8 + $0x38] sm:$0xff] }
  0x6a   :  { %1029 = vmatpush3.bf16.msra.mxu0 %v1159_v5  ;;  %1016 = vmatprep.mubr.msk.bf16.mxu0 %vm190_vm0, %v1160_v6  ;;  %v1092_v42 = vpack.c.bf16 %v769_v41, %v768_v40  ;;  %v1095_v45 = vpack.c.bf16 %v771_v44, %v770_v43  ;;  %v772_v46 = vld [vmem:[#allocation8 + $0x40] sm:$0xff]  ;;  %v773_v47 = vld [vmem:[#allocation8 + $0x48] sm:$0xff]  ;;  %v774_v49 = vld [vmem:[#allocation8 + $0x50] sm:$0xff] }
  0x6b   :  { %1030 = vmatprep.subr.bf16.mxu0 %v1162_v7  ;;  %1085 = vmatprep.subr.bf16.mxu1 %v1336_v36  ;;  %v1098_v48 = vpack.c.bf16 %v773_v47, %v772_v46  ;;  %v775_v50 = vld [vmem:[#allocation8 + $0x58] sm:$0xff]  ;;  %v776_v52 = vld [vmem:[#allocation8 + $0x60] sm:$0xff]  ;;  %v777_v53 = vld [vmem:[#allocation8 + $0x68] sm:$0xff] }
  0x6c   :  { %991 = vmatmul.mubr.msk.bf16.vlgmr.msra.gmra.mrb[0].mxu1 %vm190_vm0, %v1172_v15  ;;  %v1101_v51 = vpack.c.bf16 %v775_v50, %v774_v49  ;;  %v1104_v54 = vpack.c.bf16 %v777_v53, %v776_v52  ;;  %v778_v55 = vld [vmem:[#allocation8 + $0x70] sm:$0xff]  ;;  %v779_v56 = vld [vmem:[#allocation8 + $0x78] sm:$0xff] }
  0x6d   :  { %994 = vmatprep.mubr.msk.bf16.mxu1 %vm190_vm0, %v1175_v16  ;;  %1087 = vmatpush3.bf16.msra.mxu1 %v1086_v35  ;;  %v1107_v57 = vpack.c.bf16 %v779_v56, %v778_v55  ;;  %v1467_v9 = vld [vmem:[#allocation7] ss:$0 sm:$0xff] }
  0x6e   :  { %1031 = vmatpush3.bf16.msra.mxu0 %v1162_v7  ;;  %1088 = vmatprep.subr.bf16.mxu1 %v1336_v36 }
  0x6f   :  { %1032 = vmatprep.subr.bf16.mxu0 %v1167_v10 }
  0x71   :  { %1017 = vmatmul.mubr.msk.bf16.gmra.mrb[4].mxu0 %vm190_vm0, %v1161_v13  ;;  %1090 = vmatpush3.bf16.msra.mxu1 %v1089_v39 }
  0x72   :  { %1020 = vmatprep.mubr.msk.bf16.mxu0 %vm190_vm0, %v1163_v14  ;;  %1033 = vmatpush3.bf16.msra.mxu0 %v1167_v10 }
  0x73   :  { %1091 = vmatprep.subr.bf16.mxu1 %v1336_v36 }
  0x74   :  { %995 = vmatmul.mubr.msk.bf16.gmra.mrb[4].mxu1 %vm190_vm0, %v1176_v19 }
  0x75   :  { %998 = vmatprep.mubr.msk.bf16.mxu1 %vm190_vm0, %v1179_v20  ;;  %1093 = vmatpush3.bf16.msra.mxu1 %v1092_v42 }
  0x76   :  { %1094 = vmatprep.subr.bf16.mxu1 %v1336_v36 }
  0x79   :  { %1021 = vmatmul.mubr.msk.bf16.gmra.mrb[8].mxu0 %vm190_vm0, %v1164_v17  ;;  %1096 = vmatpush3.bf16.msra.mxu1 %v1095_v45 }
  0x7a   :  { %1024 = vmatprep.mubr.msk.bf16.mxu0 %vm190_vm0, %v1168_v18  ;;  %1097 = vmatprep.subr.bf16.mxu1 %v1336_v36 }
  0x7c   :  { %999 = vmatmul.mubr.msk.bf16.gmra.mrb[8].mxu1 %vm190_vm0, %v1180_v23 }
  0x7d   :  { %1002 = vmatprep.mubr.msk.bf16.mxu1 %vm190_vm0, %v1183_v24  ;;  %1099 = vmatpush3.bf16.msra.mxu1 %v1098_v48 }
  0x7e   :  { %1100 = vmatprep.subr.bf16.mxu1 %v1336_v36 }
  0x81   :  { %1025 = vmatmul.mubr.msk.bf16.gmra.mrb[12].mxu0 %vm190_vm0, %v1169_v21  ;;  %1102 = vmatpush3.bf16.msra.mxu1 %v1101_v51 }
  0x82   :  { %1034 = vmatprep.mubr.msk.bf16.mxu0 %vm190_vm0, %v1173_v22  ;;  %1103 = vmatprep.subr.bf16.mxu1 %v1336_v36 }
  0x84   :  { %1003 = vmatmul.mubr.msk.bf16.gmra.mrb[12].mxu1 %vm190_vm0, %v1184_v27 }
  0x85   :  { %1105 = vmatpush3.bf16.msra.mxu1 %v1104_v54  ;;  %1082 = vmatprep.mubr.msk.f32.mxu1 %vm1337_vm1, %v1338_v58 }
  0x86   :  { %1106 = vmatprep.subr.bf16.mxu1 %v1336_v36 }
  0x89   :  { %1035 = vmatmul.mubr.msk.bf16.vlgmr.msra.gmra.mrb[0].mxu0 %vm190_vm0, %v1174_v25  ;;  %1108 = vmatpush3.bf16.msra.mxu1 %v1107_v57 }
  0x8a   :  { %1038 = vmatprep.mubr.msk.bf16.mxu0 %vm190_vm0, %v1177_v26 }
  0x91   :  { %1039 = vmatmul.mubr.msk.bf16.gmra.mrb[4].mxu0 %vm190_vm0, %v1178_v28 }
  0x92   :  { %1042 = vmatprep.mubr.msk.bf16.mxu0 %vm190_vm0, %v1181_v29 }
  0x99   :  { %1043 = vmatmul.mubr.msk.bf16.gmra.mrb[8].mxu0 %vm190_vm0, %v1182_v30 }
  0x9a   :  { %1046 = vmatprep.mubr.msk.bf16.mxu0 %vm190_vm0, %v1185_v31 }
  0xa1   :  { %1047 = vmatmul.mubr.msk.bf16.gmra.mrb[12].mxu0 %vm190_vm0, %v1186_v32 }
 0x13f   :  { %v992_v59 = vpop.f32.mrb[0].mxu1 }
 0x140   :  { %v249_v60 = vpop.f32.mrb[1].mxu1 }
 0x141   :  { %v993_v61 = vpop.f32.mrb[2].mxu1 }
 0x142   :  { %v252_v62 = vpop.f32.mrb[3].mxu1 }
 0x147   :  { %v996_v63 = vpop.f32.mrb[4].mxu1 }
 0x148   :  { %v265_v0 = vpop.f32.mrb[5].mxu1 }
 0x149   :  { %v997_v1 = vpop.f32.mrb[6].mxu1 }
 0x14a   :  { %v268_v2 = vpop.f32.mrb[7].mxu1 }
 0x14f   :  { %v1000_v3 = vpop.f32.mrb[8].mxu1 }
 0x150   :  { %v281_v4 = vpop.f32.mrb[9].mxu1 }
 0x151   :  { %v1001_v5 = vpop.f32.mrb[10].mxu1 }
 0x152   :  { %v284_v6 = vpop.f32.mrb[11].mxu1 }
 0x157   :  { %v1004_v15 = vpop.f32.mrb[12].mxu1 }
 0x158   :  { %v297_v18 = vpop.f32.mrb[13].mxu1 }
 0x159   :  { %v1005_v19 = vpop.f32.mrb[14].mxu1 }
 0x15a   :  { %v300_v22 = vpop.f32.mrb[15].mxu1 }
 0x15c   :  { %v1036_v7 = vpop.f32.mrb[0].mxu0 }
 0x15d   :  { %v1109_v8 = vadd.f32 %v1036_v7, %v992_v59  ;;  %v631_v10 = vpop.f32.mrb[1].mxu0 }
 0x15e   :  { %v1110_v11 = vadd.f32 %v631_v10, %v249_v60  ;;  %v1037_v12 = vpop.f32.mrb[2].mxu0 }
 0x15f   :  { %v1111_v13 = vadd.f32 %v1037_v12, %v993_v61  ;;  %v634_v14 = vpop.f32.mrb[3].mxu0  ;;  %v719_v20 = vadd.f32 %v1109_v8, %v1467_v9 }
 0x160   :  { %v717_v16 = vadd.f32 %v1110_v11, %v1467_v9  ;;  %v1112_v17 = vadd.f32 %v634_v14, %v252_v62 }
 0x161   :  { %v720_v24 = vadd.f32 %v1111_v13, %v1467_v9  ;;  %v735_v29 = vmax.f32 %v719_v20, 0.0 }
 0x162   :  { %v718_v21 = vadd.f32 %v1112_v17, %v1467_v9  ;;  %v733_v23 = vmax.f32 %v717_v16, 0.0 }
 0x163   :  { %v736_v35 = vmax.f32 %v720_v24, 0.0 }
 0x164   :  { %v734_v25 = vmax.f32 %v718_v21, 0.0  ;;  %v1040_v26 = vpop.f32.mrb[4].mxu0 }
 0x165   :  { %v1113_v27 = vadd.f32 %v1040_v26, %v996_v63  ;;  %v647_v28 = vpop.f32.mrb[5].mxu0 }
 0x166   :  { %v749_v30 = vadd.f32 %v734_v25, %v733_v23  ;;  %v1114_v31 = vadd.f32 %v647_v28, %v265_v0  ;;  %v1041_v32 = vpop.f32.mrb[6].mxu0 }
 0x167   :  { %v1115_v33 = vadd.f32 %v1041_v32, %v997_v1  ;;  %v650_v34 = vpop.f32.mrb[7].mxu0  ;;  %v723_v39 = vadd.f32 %v1113_v27, %v1467_v9 }
 0x168   :  { %v750_v36 = vadd.f32 %v749_v30, %v735_v29  ;;  %v721_v37 = vadd.f32 %v1114_v31, %v1467_v9  ;;  %v1116_v38 = vadd.f32 %v650_v34, %v268_v2  ;;  %v933_v29 = vld [vmem:[#allocation10] ss:$0 sm:$0xff] }
 0x169   :  { %v724_v44 = vadd.f32 %v1115_v33, %v1467_v9  ;;  %v739_v49 = vmax.f32 %v723_v39, 0.0 }
 0x16a   :  { %v737_v40 = vmax.f32 %v721_v37, 0.0  ;;  %v751_v41 = vadd.f32 %v750_v36, %v736_v35  ;;  %v722_v42 = vadd.f32 %v1116_v38, %v1467_v9 }
 0x16b   :  { %v740_v55 = vmax.f32 %v724_v44, 0.0 }
 0x16c   :  { %v752_v43 = vadd.f32 %v751_v41, %v737_v40  ;;  %v738_v45 = vmax.f32 %v722_v42, 0.0  ;;  %v1044_v46 = vpop.f32.mrb[8].mxu0 }
 0x16d   :  { %v1117_v47 = vadd.f32 %v1044_v46, %v1000_v3  ;;  %v663_v48 = vpop.f32.mrb[9].mxu0 }
 0x16e   :  { %v753_v50 = vadd.f32 %v752_v43, %v738_v45  ;;  %v1118_v51 = vadd.f32 %v663_v48, %v281_v4  ;;  %v1045_v52 = vpop.f32.mrb[10].mxu0 }
 0x16f   :  { %v1119_v53 = vadd.f32 %v1045_v52, %v1001_v5  ;;  %v666_v54 = vpop.f32.mrb[11].mxu0  ;;  %v727_v59 = vadd.f32 %v1117_v47, %v1467_v9 }
 0x170   :  { %v754_v56 = vadd.f32 %v753_v50, %v739_v49  ;;  %v725_v57 = vadd.f32 %v1118_v51, %v1467_v9  ;;  %v1120_v58 = vadd.f32 %v666_v54, %v284_v6 }
 0x171   :  { %v728_v0 = vadd.f32 %v1119_v53, %v1467_v9  ;;  %v743_v5 = vmax.f32 %v727_v59, 0.0 }
 0x172   :  { %v741_v60 = vmax.f32 %v725_v57, 0.0  ;;  %v755_v61 = vadd.f32 %v754_v56, %v740_v55  ;;  %v726_v62 = vadd.f32 %v1120_v58, %v1467_v9 }
 0x173   :  { %v744_v6 = vmax.f32 %v728_v0, 0.0 }
 0x174   :  { %v756_v63 = vadd.f32 %v755_v61, %v741_v60  ;;  %v742_v1 = vmax.f32 %v726_v62, 0.0  ;;  %v1048_v2 = vpop.f32.mrb[12].mxu0 }
 0x175   :  { %v1121_v3 = vadd.f32 %v1048_v2, %v1004_v15  ;;  %v679_v4 = vpop.f32.mrb[13].mxu0 }
 0x176   :  { %v757_v7 = vadd.f32 %v756_v63, %v742_v1  ;;  %v1122_v8 = vadd.f32 %v679_v4, %v297_v18  ;;  %v1049_v10 = vpop.f32.mrb[14].mxu0 }
 0x177   :  { %v1123_v11 = vadd.f32 %v1049_v10, %v1005_v19  ;;  %v682_v12 = vpop.f32.mrb[15].mxu0  ;;  %v731_v17 = vadd.f32 %v1121_v3, %v1467_v9 }
 0x178   :  { %v758_v13 = vadd.f32 %v757_v7, %v743_v5  ;;  %v729_v14 = vadd.f32 %v1122_v8, %v1467_v9  ;;  %v1124_v16 = vadd.f32 %v682_v12, %v300_v22 }
 0x179   :  { %v732_v15 = vadd.f32 %v1123_v11, %v1467_v9  ;;  %v747_v26 = vmax.f32 %v731_v17, 0.0 }
 0x17a   :  { %v745_v20 = vmax.f32 %v729_v14, 0.0  ;;  %v759_v21 = vadd.f32 %v758_v13, %v744_v6  ;;  %v730_v23 = vadd.f32 %v1124_v16, %v1467_v9 }
 0x17b   :  { %v748_v27 = vmax.f32 %v732_v15, 0.0 }
 0x17c   :  { %v760_v24 = vadd.f32 %v759_v21, %v745_v20  ;;  %v746_v25 = vmax.f32 %v730_v23, 0.0 }
 0x17e   :  { %v761_v18 = vadd.f32 %v760_v24, %v746_v25 }
 0x180   :  { %v762_v19 = vadd.f32 %v761_v18, %v747_v26 }
 0x182   :  { %v763_v28 = vadd.f32 %v762_v19, %v748_v27 }
 0x184   :  { %1083 = vmatmul.mubr.f32.vlgmr.msra.gmra.mrb[16].mxu1 %v763_v28 }
 0x257   :  { %v853_v22 = vpop.f32.mrb[16].mxu1 }
 0x258   :  { %v854_v30 = vadd.f32 %v933_v29, %v853_v22  ;;  %v1084_v31 = vpop.f32.mrb[17].mxu1 }
 0x25a   :  { %857 = vst [vmem:[#allocation11] sm:$0xff] %v854_v30 }
 0x25b   :  { %1308 = shalt.err (!%p1305_p2)
}
 0x25c   :  { %s1309_s9 = scalar_lea.hbm %s1502_s5, 128 }
 0x25d   :  { %p1310_p3 = scmp.ne.s32.totalorder %s1502_s5, %s1309_s9  ;;  %p1313_p4 = scmp.lt.u32.totalorder %s1309_s9, %s1502_s5 }
 0x25f   :  { %p1315_p5 = pnand %p1313_p4, %p1310_p3 }
 0x261   :  { %1318 = shalt.err (!%p1315_p5)
}
 0x262   :  { %867 = dma.vmem_to_hbm [thread:$0]  %s865_s7, 128, %s1502_s5, [#allocation4]  }
 0x263   :  { %1325 = dma.done.wait [#allocation4], 128  }
 0x264   :  { %1326 = vsyncadd [#allocation4], 4294967168 }
 0x265   :  { %871 = vsyncpa [#allocation3], 1 }
 0x266   :  { %872 = vsyncpa [#allocation6], 1 }
 0x267   :  { %873 = vsyncpa [#allocation9], 1 }
 0x268   :  { %874 = vsyncpa [#allocation4], 1 }

</bundles_post_ra>
